<compile_context>
chip_gen: v7x
topology: tpu7x:2x2x1
jax: 0.10.0
libtpu: 0.0.40
codegen_flags: <defaults>
</compile_context>

<pallas_src>
import functools

import jax
import jax.numpy as jnp
from jax.experimental import pallas as pl
from jax.experimental.pallas import tpu as pltpu

SUB = 8       # f32 sublane granularity (batch padding / split alignment)
KALIGN = 16   # bf16 packs 2 rows per sublane -> 16-aligned weight row offsets


def _round_up(x, m):
    return (x + m - 1) // m * m


# --------------------------------------------------------------------------
# Kernel
# --------------------------------------------------------------------------
def siamese_kernel(m_ref, s_ref, w256_ref, w128_ref, b_ref, out_ref, *,
                   o256, r256, o128, r128, bp):
    """Fused SiameseSMPredictor forward.

    m_ref   : (2*bp, k0)  bf16  [m_t ; m_tp] stacked along batch (padded)
    s_ref   : (bp, ks)    bf16  s_t (padded)
    w256_ref: (560, 256)  bf16  packed weights with 256-lane outputs
                               [enc0 | pred0_ht | pred0_htp | pred0_s | pred1]
    w128_ref: (896, 128)  bf16  packed weights with 128-lane outputs
                               [enc1 | enc2 | enc3 | pred2 | pred3]
    b_ref   : (8, 256)    f32   packed biases (rows: enc0..enc3, pred0..pred3)
    out_ref : (bp, 128)   f32   s_pred (padded; sliced in the wrapper)

    o*/r* are static, 16-aligned row offsets/extents into the weight buffers.
    """

    def w256(i):
        return w256_ref[o256[i]:o256[i] + r256[i], :]

    def w128(i):
        return w128_ref[o128[i]:o128[i] + r128[i], :]

    def lin(x_bf16, w, bias_row, n, relu):
        y = jnp.dot(x_bf16, w, preferred_element_type=jnp.float32)
        y = y + b_ref[bias_row:bias_row + 1, :n]
        if relu:
            y = jnp.maximum(y, 0.0)
        return y

    # Shared m_encoder: both siamese branches in one pass on the stacked batch.
    x = m_ref[...]                                              # (2bp, k0) bf16
    x = lin(x, w256(0), 0, 256, True).astype(jnp.bfloat16)      # enc0 -> (2bp, 256)
    x = lin(x, w128(0), 1, 128, True).astype(jnp.bfloat16)      # enc1 -> (2bp, 128)
    x = lin(x, w128(1), 2, 128, True).astype(jnp.bfloat16)      # enc2 -> (2bp, 128)
    h = lin(x, w128(2), 3, 128, False)                          # enc3 -> (2bp, 128) f32
    # Split the stacked encoder output BEFORE the bf16 cast: an f32 split at a
    # multiple of 8 sublanes is vreg-aligned and free.
    h_t = h[:bp, :].astype(jnp.bfloat16)
    h_tp = h[bp:, :].astype(jnp.bfloat16)

    # s_predictor layer 0: cat((h_t, h_tp, s_t), 1) @ W0 + b0, realized exactly
    # as a sum of partial matmuls against row blocks of W0 (no lane concat).
    z = (jnp.dot(h_t, w256(1), preferred_element_type=jnp.float32)
         + jnp.dot(h_tp, w256(2), preferred_element_type=jnp.float32)
         + jnp.dot(s_ref[...], w256(3), preferred_element_type=jnp.float32)
         + b_ref[4:5, :])
    z = jnp.maximum(z, 0.0).astype(jnp.bfloat16)                # (bp, 256)

    z = lin(z, w256(4), 5, 256, True).astype(jnp.bfloat16)      # pred1 -> (bp, 256)
    z = lin(z, w128(3), 6, 128, True).astype(jnp.bfloat16)      # pred2 -> (bp, 128)
    out_ref[...] = lin(z, w128(4), 7, 128, False).astype(out_ref.dtype)  # pred3


# --------------------------------------------------------------------------
# Parameters (synthetic, nn.Linear-style init) and packing
# --------------------------------------------------------------------------
def init_params(key, dim_m, dim_h, dim_s):
    """Weights already transposed to (in, out); biases (1, out). Pure f32."""
    enc_dims = [(dim_m, 150), (150, 100), (100, 50), (50, dim_h)]
    pred_dims = [(2 * dim_h + dim_s, 200), (200, 150), (150, 100), (100, dim_s)]

    params = {"enc": [], "pred": []}
    keys = jax.random.split(key, 2 * (len(enc_dims) + len(pred_dims)))
    ki = 0
    for name, dims in (("enc", enc_dims), ("pred", pred_dims)):
        for d_in, d_out in dims:
            scale = 1.0 / jnp.sqrt(jnp.float32(d_in))
            w = jax.random.uniform(keys[ki], (d_in, d_out), jnp.float32,
                                   minval=-scale, maxval=scale)
            b = jax.random.uniform(keys[ki + 1], (1, d_out), jnp.float32,
                                   minval=-scale, maxval=scale)
            params[name].append((w, b))
            ki += 2
    return params


def pack_params(params, dim_m, dim_h, dim_s):
    """Pack weights into two bf16 buffers (128-lane / 256-lane outputs) and all
    biases into one (8, 256) f32 buffer.  Every chunk's K rows are padded to
    the padded lane width of the activation that feeds it, and every row
    offset is 16-aligned (bf16 sublane packing)."""
    k0 = _round_up(dim_m, KALIGN)
    ks = _round_up(dim_s, KALIGN)

    (ew0, eb0), (ew1, eb1), (ew2, eb2), (ew3, eb3) = params["enc"]
    (pw0, pb0), (pw1, pb1), (pw2, pb2), (pw3, pb3) = params["pred"]

    # Split the first predictor weight by input rows: (h_t | h_tp | s_t).
    pw0_ht, pw0_htp, pw0_s = pw0[:dim_h], pw0[dim_h:2 * dim_h], pw0[2 * dim_h:]

    # (weight, padded K rows).  K matches the padded width of the feeding
    # activation: m->k0, s->ks, 256-lane activations->256, 128-lane->128.
    chunks256 = [(ew0, k0), (pw0_ht, 128), (pw0_htp, 128), (pw0_s, ks), (pw1, 256)]
    chunks128 = [(ew1, 256), (ew2, 128), (ew3, 128), (pw2, 256), (pw3, 128)]

    def pack(chunks, lanes):
        offs, rows, bufs = [], [], []
        off = 0
        for w, kpad in chunks:
            r, c = w.shape
            wp = jnp.zeros((kpad, lanes), jnp.float32).at[:r, :c].set(w)
            bufs.append(wp)
            offs.append(off)
            rows.append(kpad)
            off += kpad
        return (jnp.concatenate(bufs, axis=0).astype(jnp.bfloat16),
                tuple(offs), tuple(rows))

    w256, o256, r256 = pack(chunks256, 256)
    w128, o128, r128 = pack(chunks128, 128)

    biases = [eb0, eb1, eb2, eb3, pb0, pb1, pb2, pb3]
    b_packed = jnp.zeros((len(biases), 256), jnp.float32)
    for i, bb in enumerate(biases):
        b_packed = b_packed.at[i, :bb.shape[-1]].set(bb.reshape(-1))

    layout = (o256, r256, o128, r128)
    return w256, w128, b_packed, layout


# --------------------------------------------------------------------------
# Wrapper
# --------------------------------------------------------------------------
@functools.partial(jax.jit, static_argnames=("layout",))
def siamese_forward(m_t, m_tp, s_t, w256, w128, b_packed, *, layout):
    o256, r256, o128, r128 = layout
    b, dim_m = m_t.shape
    dim_s = s_t.shape[1]
    bp = _round_up(b, SUB)
    k0 = _round_up(dim_m, KALIGN)
    ks = _round_up(dim_s, KALIGN)

    # Stack the two siamese branches along batch; pad batch & lanes with zeros.
    m = jnp.zeros((2 * bp, k0), jnp.float32)
    m = m.at[:b, :dim_m].set(m_t).at[bp:bp + b, :dim_m].set(m_tp)
    m = m.astype(jnp.bfloat16)
    s = jnp.zeros((bp, ks), jnp.float32).at[:b, :dim_s].set(s_t).astype(jnp.bfloat16)

    kern = functools.partial(siamese_kernel, o256=o256, r256=r256,
                             o128=o128, r128=r128, bp=bp)

    flops = (2 * (2 * bp) * (k0 * 256 + 256 * 128 + 128 * 128 + 128 * 128)
             + 2 * bp * (128 * 256 + 128 * 256 + ks * 256            # pred0
                         + 256 * 256 + 256 * 128 + 128 * 128))       # pred1..3
    bytes_accessed = (w256.size * 2 + w128.size * 2 + b_packed.size * 4
                      + m.size * 2 + s.size * 2 + bp * 128 * 4)

    vmem = pl.BlockSpec(memory_space=pltpu.MemorySpace.VMEM)
    out = pl.pallas_call(
        kern,
        out_shape=jax.ShapeDtypeStruct((bp, 128), jnp.float32),
        in_specs=[vmem, vmem, vmem, vmem, vmem],
        out_specs=vmem,
        cost_estimate=pl.CostEstimate(flops=flops, transcendentals=0,
                                      bytes_accessed=bytes_accessed),
    )(m, s, w256, w128, b_packed)
    return out[:b, :dim_s]


# --------------------------------------------------------------------------
# Pure-JAX f32 reference (mirrors the PyTorch forward)
# --------------------------------------------------------------------------
def reference_forward(m_t, m_tp, s_t, params):
    def encode(x):
        for i, (w, bb) in enumerate(params["enc"]):
            x = x @ w + bb
            if i < 3:
                x = jnp.maximum(x, 0.0)
        return x

    h_t, h_tp = encode(m_t), encode(m_tp)
    z = jnp.concatenate([h_t, h_tp, s_t], axis=1)
    for i, (w, bb) in enumerate(params["pred"]):
        z = z @ w + bb
        if i < 3:
            z = jnp.maximum(z, 0.0)
    return z


if __name__ == "__main__":
    # Small shapes consistent with the module constructor (activation='relu').
    batch, dim_m, dim_h, dim_s = 4, 32, 16, 8

    key = jax.random.PRNGKey(0)
    k_mt, k_mtp, k_st, k_params = jax.random.split(key, 4)

    m_t = jax.random.normal(k_mt, (batch, dim_m), jnp.float32)
    m_tp = jax.random.normal(k_mtp, (batch, dim_m), jnp.float32)
    s_t = jax.random.normal(k_st, (batch, dim_s), jnp.float32)

    params = init_params(k_params, dim_m, dim_h, dim_s)
    w256, w128, b_packed, layout = pack_params(params, dim_m, dim_h, dim_s)

    out = siamese_forward(m_t, m_tp, s_t, w256, w128, b_packed, layout=layout)
    out = jax.block_until_ready(out)

    ref = reference_forward(m_t, m_tp, s_t, params)
    assert out.shape == (batch, dim_s)
    # bf16 matmul operands with f32 accumulation -> loose-but-safe tolerance.
    max_err = jnp.max(jnp.abs(out - ref))
    assert jnp.allclose(out, ref, atol=2e-2, rtol=2e-2), f"max abs err {max_err}"

    print("KERNEL_OK")
</pallas_src>

<mosaic_0001>
module attributes {stable_mosaic.version = 11 : i64} {
  func.func @siamese_kernel(%arg0: memref<16x32xbf16, #tpu.memory_space<vmem>>, %arg1: memref<8x16xbf16, #tpu.memory_space<vmem>>, %arg2: memref<560x256xbf16, #tpu.memory_space<vmem>>, %arg3: memref<896x128xbf16, #tpu.memory_space<vmem>>, %arg4: memref<8x256xf32, #tpu.memory_space<vmem>>, %arg5: memref<8x128xf32, #tpu.memory_space<vmem>>) attributes {dimension_semantics = [], scalar_prefetch = 0 : i64, scratch_operands = 0 : i64, tpu.core_type = #tpu.core_type<tc>} {
    %c0 = arith.constant 0 : index
    %c0_0 = arith.constant 0 : index
    %0 = vector.load %arg0[%c0, %c0_0] : memref<16x32xbf16, #tpu.memory_space<vmem>>, vector<16x32xbf16>
    %c0_1 = arith.constant 0 : index
    %c0_2 = arith.constant 0 : index
    %1 = vector.load %arg2[%c0_1, %c0_2] : memref<560x256xbf16, #tpu.memory_space<vmem>>, vector<32x256xbf16>
    %cst = arith.constant dense<0.000000e+00> : vector<16x256xf32>
    %2 = tpu.matmul %0, %1, %cst {dimension_numbers = #tpu.dot_dimension_numbers<[1], [0], [0], [1], [0, 0, 1, 1], [], []>} : vector<16x32xbf16>, vector<32x256xbf16>, vector<16x256xf32> -> vector<16x256xf32>
    %c0_3 = arith.constant 0 : index
    %c0_4 = arith.constant 0 : index
    %3 = vector.load %arg4[%c0_3, %c0_4] : memref<8x256xf32, #tpu.memory_space<vmem>>, vector<1x256xf32>
    %4 = vector.broadcast %3 : vector<1x256xf32> to vector<16x256xf32>
    %5 = arith.addf %2, %4 : vector<16x256xf32>
    %cst_5 = arith.constant 0.000000e+00 : f32
    %6 = vector.broadcast %cst_5 : f32 to vector<16x256xf32>
    %7 = arith.maximumf %5, %6 : vector<16x256xf32>
    %8 = arith.truncf %7 : vector<16x256xf32> to vector<16x256xbf16>
    %c0_6 = arith.constant 0 : index
    %c0_7 = arith.constant 0 : index
    %9 = vector.load %arg3[%c0_6, %c0_7] : memref<896x128xbf16, #tpu.memory_space<vmem>>, vector<256x128xbf16>
    %cst_8 = arith.constant dense<0.000000e+00> : vector<16x128xf32>
    %10 = tpu.matmul %8, %9, %cst_8 {dimension_numbers = #tpu.dot_dimension_numbers<[1], [0], [0], [1], [0, 0, 1, 1], [], []>} : vector<16x256xbf16>, vector<256x128xbf16>, vector<16x128xf32> -> vector<16x128xf32>
    %c1 = arith.constant 1 : index
    %c0_9 = arith.constant 0 : index
    %11 = vector.load %arg4[%c1, %c0_9] : memref<8x256xf32, #tpu.memory_space<vmem>>, vector<1x128xf32>
    %12 = vector.broadcast %11 : vector<1x128xf32> to vector<16x128xf32>
    %13 = arith.addf %10, %12 : vector<16x128xf32>
    %cst_10 = arith.constant 0.000000e+00 : f32
    %14 = vector.broadcast %cst_10 : f32 to vector<16x128xf32>
    %15 = arith.maximumf %13, %14 : vector<16x128xf32>
    %16 = arith.truncf %15 : vector<16x128xf32> to vector<16x128xbf16>
    %c256 = arith.constant 256 : index
    %c0_11 = arith.constant 0 : index
    %17 = vector.load %arg3[%c256, %c0_11] : memref<896x128xbf16, #tpu.memory_space<vmem>>, vector<128x128xbf16>
    %cst_12 = arith.constant dense<0.000000e+00> : vector<16x128xf32>
    %18 = tpu.matmul %16, %17, %cst_12 {dimension_numbers = #tpu.dot_dimension_numbers<[1], [0], [0], [1], [0, 0, 1, 1], [], []>} : vector<16x128xbf16>, vector<128x128xbf16>, vector<16x128xf32> -> vector<16x128xf32>
    %c2 = arith.constant 2 : index
    %c0_13 = arith.constant 0 : index
    %19 = vector.load %arg4[%c2, %c0_13] : memref<8x256xf32, #tpu.memory_space<vmem>>, vector<1x128xf32>
    %20 = vector.broadcast %19 : vector<1x128xf32> to vector<16x128xf32>
    %21 = arith.addf %18, %20 : vector<16x128xf32>
    %cst_14 = arith.constant 0.000000e+00 : f32
    %22 = vector.broadcast %cst_14 : f32 to vector<16x128xf32>
    %23 = arith.maximumf %21, %22 : vector<16x128xf32>
    %24 = arith.truncf %23 : vector<16x128xf32> to vector<16x128xbf16>
    %c384 = arith.constant 384 : index
    %c0_15 = arith.constant 0 : index
    %25 = vector.load %arg3[%c384, %c0_15] : memref<896x128xbf16, #tpu.memory_space<vmem>>, vector<128x128xbf16>
    %cst_16 = arith.constant dense<0.000000e+00> : vector<16x128xf32>
    %26 = tpu.matmul %24, %25, %cst_16 {dimension_numbers = #tpu.dot_dimension_numbers<[1], [0], [0], [1], [0, 0, 1, 1], [], []>} : vector<16x128xbf16>, vector<128x128xbf16>, vector<16x128xf32> -> vector<16x128xf32>
    %c3 = arith.constant 3 : index
    %c0_17 = arith.constant 0 : index
    %27 = vector.load %arg4[%c3, %c0_17] : memref<8x256xf32, #tpu.memory_space<vmem>>, vector<1x128xf32>
    %28 = vector.broadcast %27 : vector<1x128xf32> to vector<16x128xf32>
    %29 = arith.addf %26, %28 : vector<16x128xf32>
    %30 = vector.extract_strided_slice %29 {offsets = [0, 0], sizes = [8, 128], strides = [1, 1]} : vector<16x128xf32> to vector<8x128xf32>
    %31 = arith.truncf %30 : vector<8x128xf32> to vector<8x128xbf16>
    %32 = vector.extract_strided_slice %29 {offsets = [8, 0], sizes = [8, 128], strides = [1, 1]} : vector<16x128xf32> to vector<8x128xf32>
    %33 = arith.truncf %32 : vector<8x128xf32> to vector<8x128xbf16>
    %c32 = arith.constant 32 : index
    %c0_18 = arith.constant 0 : index
    %34 = vector.load %arg2[%c32, %c0_18] : memref<560x256xbf16, #tpu.memory_space<vmem>>, vector<128x256xbf16>
    %cst_19 = arith.constant dense<0.000000e+00> : vector<8x256xf32>
    %35 = tpu.matmul %31, %34, %cst_19 {dimension_numbers = #tpu.dot_dimension_numbers<[1], [0], [0], [1], [0, 0, 1, 1], [], []>} : vector<8x128xbf16>, vector<128x256xbf16>, vector<8x256xf32> -> vector<8x256xf32>
    %c160 = arith.constant 160 : index
    %c0_20 = arith.constant 0 : index
    %36 = vector.load %arg2[%c160, %c0_20] : memref<560x256xbf16, #tpu.memory_space<vmem>>, vector<128x256xbf16>
    %cst_21 = arith.constant dense<0.000000e+00> : vector<8x256xf32>
    %37 = tpu.matmul %33, %36, %cst_21 {dimension_numbers = #tpu.dot_dimension_numbers<[1], [0], [0], [1], [0, 0, 1, 1], [], []>} : vector<8x128xbf16>, vector<128x256xbf16>, vector<8x256xf32> -> vector<8x256xf32>
    %38 = arith.addf %35, %37 : vector<8x256xf32>
    %c0_22 = arith.constant 0 : index
    %c0_23 = arith.constant 0 : index
    %39 = vector.load %arg1[%c0_22, %c0_23] : memref<8x16xbf16, #tpu.memory_space<vmem>>, vector<8x16xbf16>
    %c288 = arith.constant 288 : index
    %c0_24 = arith.constant 0 : index
    %40 = vector.load %arg2[%c288, %c0_24] : memref<560x256xbf16, #tpu.memory_space<vmem>>, vector<16x256xbf16>
    %cst_25 = arith.constant dense<0.000000e+00> : vector<8x256xf32>
    %41 = tpu.matmul %39, %40, %cst_25 {dimension_numbers = #tpu.dot_dimension_numbers<[1], [0], [0], [1], [0, 0, 1, 1], [], []>} : vector<8x16xbf16>, vector<16x256xbf16>, vector<8x256xf32> -> vector<8x256xf32>
    %42 = arith.addf %38, %41 : vector<8x256xf32>
    %c4 = arith.constant 4 : index
    %c0_26 = arith.constant 0 : index
    %43 = vector.load %arg4[%c4, %c0_26] : memref<8x256xf32, #tpu.memory_space<vmem>>, vector<1x256xf32>
    %44 = vector.broadcast %43 : vector<1x256xf32> to vector<8x256xf32>
    %45 = arith.addf %42, %44 : vector<8x256xf32>
    %cst_27 = arith.constant 0.000000e+00 : f32
    %46 = vector.broadcast %cst_27 : f32 to vector<8x256xf32>
    %47 = arith.maximumf %45, %46 : vector<8x256xf32>
    %48 = arith.truncf %47 : vector<8x256xf32> to vector<8x256xbf16>
    %c304 = arith.constant 304 : index
    %c0_28 = arith.constant 0 : index
    %49 = vector.load %arg2[%c304, %c0_28] : memref<560x256xbf16, #tpu.memory_space<vmem>>, vector<256x256xbf16>
    %cst_29 = arith.constant dense<0.000000e+00> : vector<8x256xf32>
    %50 = tpu.matmul %48, %49, %cst_29 {dimension_numbers = #tpu.dot_dimension_numbers<[1], [0], [0], [1], [0, 0, 1, 1], [], []>} : vector<8x256xbf16>, vector<256x256xbf16>, vector<8x256xf32> -> vector<8x256xf32>
    %c5 = arith.constant 5 : index
    %c0_30 = arith.constant 0 : index
    %51 = vector.load %arg4[%c5, %c0_30] : memref<8x256xf32, #tpu.memory_space<vmem>>, vector<1x256xf32>
    %52 = vector.broadcast %51 : vector<1x256xf32> to vector<8x256xf32>
    %53 = arith.addf %50, %52 : vector<8x256xf32>
    %cst_31 = arith.constant 0.000000e+00 : f32
    %54 = vector.broadcast %cst_31 : f32 to vector<8x256xf32>
    %55 = arith.maximumf %53, %54 : vector<8x256xf32>
    %56 = arith.truncf %55 : vector<8x256xf32> to vector<8x256xbf16>
    %c512 = arith.constant 512 : index
    %c0_32 = arith.constant 0 : index
    %57 = vector.load %arg3[%c512, %c0_32] : memref<896x128xbf16, #tpu.memory_space<vmem>>, vector<256x128xbf16>
    %cst_33 = arith.constant dense<0.000000e+00> : vector<8x128xf32>
    %58 = tpu.matmul %56, %57, %cst_33 {dimension_numbers = #tpu.dot_dimension_numbers<[1], [0], [0], [1], [0, 0, 1, 1], [], []>} : vector<8x256xbf16>, vector<256x128xbf16>, vector<8x128xf32> -> vector<8x128xf32>
    %c6 = arith.constant 6 : index
    %c0_34 = arith.constant 0 : index
    %59 = vector.load %arg4[%c6, %c0_34] : memref<8x256xf32, #tpu.memory_space<vmem>>, vector<1x128xf32>
    %60 = vector.broadcast %59 : vector<1x128xf32> to vector<8x128xf32>
    %61 = arith.addf %58, %60 : vector<8x128xf32>
    %cst_35 = arith.constant 0.000000e+00 : f32
    %62 = vector.broadcast %cst_35 : f32 to vector<8x128xf32>
    %63 = arith.maximumf %61, %62 : vector<8x128xf32>
    %64 = arith.truncf %63 : vector<8x128xf32> to vector<8x128xbf16>
    %c768 = arith.constant 768 : index
    %c0_36 = arith.constant 0 : index
    %65 = vector.load %arg3[%c768, %c0_36] : memref<896x128xbf16, #tpu.memory_space<vmem>>, vector<128x128xbf16>
    %cst_37 = arith.constant dense<0.000000e+00> : vector<8x128xf32>
    %66 = tpu.matmul %64, %65, %cst_37 {dimension_numbers = #tpu.dot_dimension_numbers<[1], [0], [0], [1], [0, 0, 1, 1], [], []>} : vector<8x128xbf16>, vector<128x128xbf16>, vector<8x128xf32> -> vector<8x128xf32>
    %c7 = arith.constant 7 : index
    %c0_38 = arith.constant 0 : index
    %67 = vector.load %arg4[%c7, %c0_38] : memref<8x256xf32, #tpu.memory_space<vmem>>, vector<1x128xf32>
    %68 = vector.broadcast %67 : vector<1x128xf32> to vector<8x128xf32>
    %69 = arith.addf %66, %68 : vector<8x128xf32>
    %c0_39 = arith.constant 0 : index
    %c0_40 = arith.constant 0 : index
    %70 = vector.load %arg5[%c0_39, %c0_40] : memref<8x128xf32, #tpu.memory_space<vmem>>, vector<8x128xf32>
    tpu.vector_store %arg5[%c0_39, %c0_40], %69 {strides = array<i32>} : memref<8x128xf32, #tpu.memory_space<vmem>>, vector<8x128xf32>,
    return
  }
}

</mosaic_0001>

<bundles_post_ra>
// kernel: siamese_forward.1
= control target key start
LH: loop header
LB: loop body
LE: loop exit
PB: predicated region body
PF: predicated region fallthrough
CT: control target
= control target key end

     0   :  { %10 = vsyncpa [#allocation3], 0  ;;  %s2042_s0 = inlined_call_operand.vmem [shape: bf16[16,32], index: 0, kind: input, shape index: {}]   ;;  %s2043_s1 = inlined_call_operand.vmem [shape: bf16[8,16], index: 1, kind: input, shape index: {}]   ;;  %s2044_s2 = inlined_call_operand.hbm [shape: bf16[560,256], index: 2, kind: input, shape index: {}]   ;;  %s2045_s3 = inlined_call_operand.hbm [shape: bf16[896,128], index: 3, kind: input, shape index: {}]   ;;  %s2046_s4 = inlined_call_operand.vmem [shape: f32[8,256], index: 4, kind: input, shape index: {}]   ;;  %s2047_s5 = inlined_call_operand.vmem [shape: f32[8,128], index: 5, kind: output, shape index: {}]  }
   0x1   :  { %11 = vsyncpa [#allocation5], 0  ;;  %s1902_s18 = smov [#allocation2]   ;;  %s1854_s22 = scalar_lea.hbm %s2044_s2, 8960 }
   0x2   :  { %s21_s19 = sshll.u32 %s1902_s18, 4  ;;  %p1855_p0 = scmp.ne.s32.totalorder %s2044_s2, %s1854_s22  ;;  %s22_s19 = int_to_ptr.vmem [resolvable:$true] %s21_s19 }
   0x3   :  { %p1858_p1 = scmp.lt.u32.totalorder %s1854_s22, %s2044_s2 }
   0x5   :  { %p1860_p2 = pnand %p1858_p1, %p1855_p0 }
   0x7   :  { %1863 = shalt.err (!%p1860_p2)
}
   0x8   :  { %s1864_s27 = scalar_lea.vmem %s22_s19, 8960  ;;  %p1869_p4 = scmp.lt.s32.totalorder %s22_s19, %s22_s19 }
   0x9   :  { %p1865_p3 = scmp.ne.s32.totalorder %s22_s19, %s1864_s27  ;;  %p1870_p5 = scmp.lt.s32.totalorder %s1864_s27, %s1864_s27 }
   0xb   :  { %p1871_p6 = por %p1870_p5, %p1869_p4 }
   0xd   :  { %p1872_p7 = pnand %p1871_p6, %p1865_p3 }
   0xf   :  { %1875 = shalt.err (!%p1872_p7)
}
  0x10   :  { %s1903_s28 = smov 128   ;;  %s1904_s29 = smov 8  }
  0x11   :  { %27 = dma.hbm_to_vmem [thread:$0]  %s2044_s2, 8960, %s22_s19, [#allocation3], %s1903_s28, %s1903_s28, %s1904_s29  }
  0x12   :  { %s1905_s7 = smov [#allocation4]   ;;  %s1876_s11 = scalar_lea.hbm %s2045_s3, 7168 }
  0x13   :  { %s33_s8 = sshll.u32 %s1905_s7, 4  ;;  %p1877_p8 = scmp.ne.s32.totalorder %s2045_s3, %s1876_s11  ;;  %s34_s8 = int_to_ptr.vmem [resolvable:$true] %s33_s8 }
  0x14   :  { %p1880_p9 = scmp.lt.u32.totalorder %s1876_s11, %s2045_s3 }
  0x16   :  { %p1882_p10 = pnand %p1880_p9, %p1877_p8 }
  0x18   :  { %1885 = shalt.err (!%p1882_p10)
}
  0x19   :  { %s1886_s16 = scalar_lea.vmem %s34_s8, 7168  ;;  %p1891_p12 = scmp.lt.s32.totalorder %s34_s8, %s34_s8 }
  0x1a   :  { %p1887_p11 = scmp.ne.s32.totalorder %s34_s8, %s1886_s16  ;;  %p1892_p13 = scmp.lt.s32.totalorder %s1886_s16, %s1886_s16 }
  0x1c   :  { %p1893_p0 = por %p1892_p13, %p1891_p12 }
  0x1e   :  { %p1894_p1 = pnand %p1893_p0, %p1887_p11 }
  0x20   :  { %1897 = shalt.err (!%p1894_p1)
}
  0x21   :  { %s1906_s2 = smov 64   ;;  %s1907_s17 = smov 4  }
  0x22   :  { %39 = dma.hbm_to_vmem [thread:$0]  %s2045_s3, 7168, %s34_s8, [#allocation5], %s1906_s2, %s1906_s2, %s1907_s17  }
  0x23   :  { %1898 = dma.done.wait [#allocation3], 8960  }
  0x24   :  { %1899 = vsyncadd [#allocation3], 4294958336 }
  0x25   :  { %1900 = dma.done.wait [#allocation5], 7168  }
  0x26   :  { %1901 = vsyncadd [#allocation5], 4294960128  ;;  %v1908_v0 = vmov 0   ;;  %v1692_v1 = vld [vmem:[#allocation2 + $0x4] ss:$8 sps:$4 sm:$0xff]   ;;  %v1699_v6 = vld [vmem:[#allocation4 + $0x40] sm:$0xff]   ;;  %v57_v28 = vlaneseq }
  0x27   :  { %128 = vmatprep.mubr.bf16.mxu0 %v1908_v0  ;;  %v1694_v2 = vld [vmem:[#allocation2] ss:$8 sps:$4 sm:$0xff]   ;;  %96 = vmatprep.subr.bf16.mxu0 %v1692_v1  ;;  %v1695_v3 = vld [vmem:[#allocation2 + $0x14] ss:$8 sps:$4 sm:$0xff]   ;;  %v1697_v4 = vld [vmem:[#allocation2 + $0x10] ss:$8 sps:$4 sm:$0xff]  }
  0x28   :  { %97 = vmatpush1.bf16.msra.mxu0 %v1694_v2  ;;  %v1698_v5 = vld [vmem:[%s2042_s0] sm:$0xff]   ;;  %v1700_v7 = vld [vmem:[#allocation4] sm:$0xff]   ;;  %1552 = vmatprep.subr.bf16.mxu1 %v1699_v6  ;;  %v1701_v8 = vld [vmem:[#allocation4 + $0x48] sm:$0xff]   ;;  %vm92_vm0 = vcmask 261120   ;;  %v1909_v23 = vmov 0.0   ;;  %v58_v29 = vshrl.u32 %v57_v28, 7 }
  0x29   :  { %98 = vmatprep.subr.bf16.mxu0 %v1695_v3  ;;  %1553 = vmatpush3.bf16.msra.mxu1 %v1700_v7  ;;  %v1702_v9 = vld [vmem:[#allocation4 + $0x8] sm:$0xff]   ;;  %v1703_v10 = vld [vmem:[#allocation4 + $0x50] sm:$0xff]   ;;  %v1705_v12 = vld [vmem:[#allocation4 + $0x58] sm:$0xff]   ;;  %vm1910_vm1 = vmmov 0   ;;  %vm822_vm2 = vcmask 130048  }
  0x2a   :  { %1554 = vmatprep.subr.bf16.mxu1 %v1701_v8  ;;  %v1704_v11 = vld [vmem:[#allocation4 + $0x10] sm:$0xff]   ;;  %v1706_v13 = vld [vmem:[#allocation4 + $0x18] sm:$0xff]   ;;  %v1707_v14 = vld [vmem:[#allocation4 + $0x60] sm:$0xff]   ;;  %v1976_v30 = vsub.s32 0, %v58_v29  ;;  %v1981_v32 = vsub.s32 1, %v58_v29 }
  0x2b   :  { %v1708_v15 = vld [vmem:[#allocation4 + $0x20] sm:$0xff]   ;;  %v1709_v16 = vld [vmem:[#allocation4 + $0x68] sm:$0xff]   ;;  %v1711_v18 = vld [vmem:[#allocation4 + $0x70] sm:$0xff]  }
  0x2c   :  { %99 = vmatpush1.bf16.msra.mxu0 %v1697_v4  ;;  %v1710_v17 = vld [vmem:[#allocation4 + $0x28] sm:$0xff]   ;;  %v1712_v19 = vld [vmem:[#allocation4 + $0x30] sm:$0xff]   ;;  %v1713_v20 = vld [vmem:[#allocation4 + $0x78] sm:$0xff]  }
  0x2d   :  { %1555 = vmatpush3.bf16.msra.mxu1 %v1702_v9  ;;  %v1714_v21 = vld [vmem:[#allocation4 + $0x38] sm:$0xff]   ;;  %v1715_v22 = vld [vmem:[#allocation4 + $0x80] sm:$0xff]   ;;  %1623 = vmatprep.subr.bf16.mxu0 %v1909_v23  ;;  %v1716_v24 = vld [vmem:[#allocation4 + $0x88] sm:$0xff]  }
  0x2e   :  { %1556 = vmatprep.subr.bf16.mxu1 %v1703_v10  ;;  %v1717_v25 = vld [vmem:[#allocation4 + $0x90] sm:$0xff]   ;;  %v1718_v26 = vld [vmem:[#allocation4 + $0x98] sm:$0xff]   ;;  %v1719_v27 = vld [vmem:[#allocation4 + $0xa0] sm:$0xff]  }
  0x2f   :  { %1426 = vmatmul.mubr.msk.bf16.vlgmr.msra.gmra.mrb[0].mxu0 %vm92_vm0, %v1698_v5  ;;  %v55_v31 = vld [vmem:[%s2046_s4] ss:$8 sm:$0x3]  ;;  %v1720_v49 = vld [vmem:[#allocation4 + $0xa8] sm:$0xff]   ;;  %v1723_v52 = vld [vmem:[#allocation4 + $0xc0] sm:$0xff]  }
  0x30   :  { %1624 = vmatpush3.bf16.msra.mxu0 %v1715_v22  ;;  %v60_v33 = vrot.slane %v55_v31, %v1976_v30  ;;  %v64_v34 = vrot.slane %v55_v31, %v1981_v32  ;;  %v1721_v50 = vld [vmem:[#allocation4 + $0xb0] sm:$0xff]   ;;  %v1722_v51 = vld [vmem:[#allocation4 + $0xb8] sm:$0xff]   ;;  %1639 = vmatprep.mubr.msk.bf16.mxu0 %vm1910_vm1, %v1909_v23  ;;  %v1724_v53 = vld [vmem:[#allocation4 + $0xc8] sm:$0xff]  }
  0x31   :  { %1557 = vmatpush3.bf16.msra.mxu1 %v1704_v11  ;;  %1625 = vmatprep.subr.bf16.mxu0 %v1909_v23  ;;  %v1725_v54 = vld [vmem:[#allocation4 + $0xd0] sm:$0xff]   ;;  %v1726_v55 = vld [vmem:[#allocation4 + $0xd8] sm:$0xff]   ;;  %v1727_v56 = vld [vmem:[#allocation4 + $0xe0] sm:$0xff]  }
  0x32   :  { %1558 = vmatprep.subr.bf16.mxu1 %v1705_v12  ;;  %v1728_v57 = vld [vmem:[#allocation4 + $0xe8] sm:$0xff]   ;;  %v177_v59 = vld [vmem:[%s2046_s4 + $0x1] ss:$0 sm:$0xff]  ;;  %v1730_v8 = vld [vmem:[#allocation4 + $0xf8] sm:$0xff]  }
  0x33   :  { %v1729_v7 = vld [vmem:[#allocation4 + $0xf0] sm:$0xff]   ;;  %v1742_v12 = vld [vmem:[#allocation2 + $0xb4] ss:$8 sps:$4 sm:$0xff]  }
  0x34   :  { %1626 = vmatpush3.bf16.msra.mxu0 %v1716_v24  ;;  %v1733_v9 = vld [vmem:[#allocation2 + $0x24] ss:$8 sps:$4 sm:$0xff]   ;;  %v1734_v10 = vld [vmem:[#allocation2 + $0xa0] ss:$8 sps:$4 sm:$0xff]  }
  0x35   :  { %1559 = vmatpush3.bf16.msra.mxu1 %v1706_v13  ;;  %1627 = vmatprep.subr.bf16.mxu0 %v1909_v23  ;;  %v1736_v11 = vld [vmem:[#allocation2 + $0xa4] ss:$8 sps:$4 sm:$0xff]   ;;  %v1740_v13 = vld [vmem:[#allocation2 + $0xb0] ss:$8 sps:$4 sm:$0xff]   ;;  %v1770_v24 = vld [vmem:[#allocation2 + $0x100] ss:$8 sps:$4 sm:$0xff]  }
  0x36   :  { %1560 = vmatprep.subr.bf16.mxu1 %v1707_v14  ;;  %v1748_v14 = vld [vmem:[#allocation2 + $0xc4] ss:$8 sps:$4 sm:$0xff]  }
  0x37   :  { %v1772_v22 = vld [vmem:[#allocation2 + $0x104] ss:$8 sps:$4 sm:$0xff]  }
  0x38   :  { %1628 = vmatpush3.bf16.msra.mxu0 %v1717_v25  ;;  %v334_v25 = vld [vmem:[%s2046_s4 + $0x2] ss:$0 sm:$0xff] }
  0x39   :  { %1561 = vmatpush3.bf16.msra.mxu1 %v1708_v15  ;;  %1629 = vmatprep.subr.bf16.mxu0 %v1909_v23  ;;  %v1746_v15 = vld [vmem:[#allocation2 + $0xc0] ss:$8 sps:$4 sm:$0xff]  }
  0x3a   :  { %1562 = vmatprep.subr.bf16.mxu1 %v1709_v16  ;;  %v1754_v16 = vld [vmem:[#allocation2 + $0xd4] ss:$8 sps:$4 sm:$0xff]  }
  0x3c   :  { %1630 = vmatpush3.bf16.msra.mxu0 %v1718_v26 }
  0x3d   :  { %1563 = vmatpush3.bf16.msra.mxu1 %v1710_v17  ;;  %1631 = vmatprep.subr.bf16.mxu0 %v1909_v23  ;;  %v1752_v17 = vld [vmem:[#allocation2 + $0xd0] ss:$8 sps:$4 sm:$0xff]  }
  0x3e   :  { %1564 = vmatprep.subr.bf16.mxu1 %v1711_v18  ;;  %v1760_v18 = vld [vmem:[#allocation2 + $0xe4] ss:$8 sps:$4 sm:$0xff]  }
  0x40   :  { %1632 = vmatpush3.bf16.msra.mxu0 %v1719_v27 }
  0x41   :  { %1565 = vmatpush3.bf16.msra.mxu1 %v1712_v19  ;;  %1633 = vmatprep.subr.bf16.mxu0 %v1909_v23  ;;  %v1758_v19 = vld [vmem:[#allocation2 + $0xe0] ss:$8 sps:$4 sm:$0xff]  }
  0x42   :  { %1566 = vmatprep.subr.bf16.mxu1 %v1713_v20  ;;  %v1766_v20 = vld [vmem:[#allocation2 + $0xf4] ss:$8 sps:$4 sm:$0xff]  }
  0x44   :  { %1634 = vmatpush3.bf16.msra.mxu0 %v1720_v49  ;;  %v1767_v49 = vld [vmem:[#allocation2 + $0x80] ss:$8 sps:$4 sm:$0xff]  }
  0x45   :  { %1567 = vmatpush3.bf16.msra.mxu1 %v1714_v21  ;;  %1635 = vmatprep.subr.bf16.mxu0 %v1909_v23  ;;  %v1764_v21 = vld [vmem:[#allocation2 + $0xf0] ss:$8 sps:$4 sm:$0xff]  }
  0x46   :  { %1643 = vmatprep.subr.bf16.mxu1 %v1909_v23 }
  0x48   :  { %1636 = vmatpush3.bf16.msra.mxu0 %v1721_v50  ;;  %v1775_v50 = vld [vmem:[#allocation2 + $0x94] ss:$8 sps:$4 sm:$0xff]  }
  0x49   :  { %1637 = vmatprep.subr.bf16.mxu0 %v1909_v23 }
  0x4c   :  { %1638 = vmatpush3.bf16.msra.mxu0 %v1722_v51  ;;  %v1773_v51 = vld [vmem:[#allocation2 + $0x90] ss:$8 sps:$4 sm:$0xff]  }
  0x4d   :  { %647 = vmatprep.subr.bf16.mxu0 %v1736_v11  ;;  %v1794_v11 = vld [vmem:[#allocation2 + $0x170] ss:$8 sps:$4 sm:$0xff]  }
 0x102   :  { %v130_v35 = vpop.f32.mrb[0].mxu0 }
 0x103   :  { %v131_v36 = vadd.f32 %v130_v35, %v60_v33  ;;  %v132_v37 = vpop.f32.mrb[1].mxu0 }
 0x104   :  { %v133_v38 = vadd.f32 %v132_v37, %v64_v34  ;;  %v134_v39 = vpop.f32.mrb[2].mxu0 }
 0x105   :  { %v135_v40 = vadd.f32 %v134_v39, %v60_v33  ;;  %v136_v41 = vpop.f32.mrb[3].mxu0  ;;  %v139_v43 = vmax.f32 %v131_v36, 0.0  ;;  %v1731_v36 = vld [vmem:[#allocation2 + $0x20] ss:$8 sps:$4 sm:$0xff]   ;;  %v1737_v39 = vld [vmem:[#allocation2 + $0x30] ss:$8 sps:$4 sm:$0xff]  }
 0x106   :  { %v137_v42 = vadd.f32 %v136_v41, %v64_v34  ;;  %v140_v45 = vmax.f32 %v133_v38, 0.0  ;;  %v1739_v38 = vld [vmem:[#allocation2 + $0x34] ss:$8 sps:$4 sm:$0xff]   ;;  %v1743_v41 = vld [vmem:[#allocation2 + $0x40] ss:$8 sps:$4 sm:$0xff]  }
 0x107   :  { %v141_v44 = vmax.f32 %v135_v40, 0.0  ;;  %v1745_v40 = vld [vmem:[#allocation2 + $0x44] ss:$8 sps:$4 sm:$0xff]  }
 0x108   :  { %v142_v46 = vmax.f32 %v137_v42, 0.0  ;;  %v1751_v42 = vld [vmem:[#allocation2 + $0x54] ss:$8 sps:$4 sm:$0xff]  }
 0x109   :  { %v143_v47 = vpack.c.bf16 %v141_v44, %v139_v43  ;;  %v1749_v43 = vld [vmem:[#allocation2 + $0x50] ss:$8 sps:$4 sm:$0xff]   ;;  %v1757_v44 = vld [vmem:[#allocation2 + $0x64] ss:$8 sps:$4 sm:$0xff]  }
 0x10a   :  { %v144_v48 = vpack.c.bf16 %v142_v46, %v140_v45  ;;  %v1755_v45 = vld [vmem:[#allocation2 + $0x60] ss:$8 sps:$4 sm:$0xff]   ;;  %v1763_v46 = vld [vmem:[#allocation2 + $0x74] ss:$8 sps:$4 sm:$0xff]  }
 0x10c   :  { %306 = vmatprep.mubr.bf16.mxu1 %v144_v48  ;;  %v1769_v48 = vld [vmem:[#allocation2 + $0x84] ss:$8 sps:$4 sm:$0xff]  }
 0x10d   :  { %307 = vmatmul.mubr.bf16.vlgmr.msra.gmra.mrb[0].mxu1 %v143_v47  ;;  %v1761_v47 = vld [vmem:[#allocation2 + $0x70] ss:$8 sps:$4 sm:$0xff]  }
 0x10e   :  { %1659 = vmatprep.mubr.msk.bf16.mxu1 %vm1910_vm1, %v1909_v23  ;;  %1644 = vmatpush3.bf16.msra.mxu1 %v1723_v52  ;;  %v1778_v52 = vld [vmem:[#allocation2 + $0x114] ss:$8 sps:$4 sm:$0xff]  }
 0x10f   :  { %1645 = vmatprep.subr.bf16.mxu1 %v1909_v23 }
 0x112   :  { %1646 = vmatpush3.bf16.msra.mxu1 %v1724_v53  ;;  %v1776_v53 = vld [vmem:[#allocation2 + $0x110] ss:$8 sps:$4 sm:$0xff]  }
 0x113   :  { %1647 = vmatprep.subr.bf16.mxu1 %v1909_v23 }
 0x116   :  { %1648 = vmatpush3.bf16.msra.mxu1 %v1725_v54  ;;  %v1781_v54 = vld [vmem:[#allocation2 + $0x124] ss:$8 sps:$4 sm:$0xff]  }
 0x117   :  { %1649 = vmatprep.subr.bf16.mxu1 %v1909_v23 }
 0x11a   :  { %1650 = vmatpush3.bf16.msra.mxu1 %v1726_v55  ;;  %v443_v55 = vld [vmem:[%s2046_s4 + $0x3] ss:$0 sm:$0xff] }
 0x11b   :  { %1651 = vmatprep.subr.bf16.mxu1 %v1909_v23 }
 0x11e   :  { %1652 = vmatpush3.bf16.msra.mxu1 %v1727_v56 }
 0x11f   :  { %1653 = vmatprep.subr.bf16.mxu1 %v1909_v23 }
 0x122   :  { %1654 = vmatpush3.bf16.msra.mxu1 %v1728_v57 }
 0x123   :  { %1655 = vmatprep.subr.bf16.mxu1 %v1909_v23 }
 0x126   :  { %1656 = vmatpush3.bf16.msra.mxu1 %v1729_v7  ;;  %v1790_v7 = vld [vmem:[#allocation2 + $0x154] ss:$8 sps:$4 sm:$0xff]  }
 0x127   :  { %1657 = vmatprep.subr.bf16.mxu1 %v1909_v23 }
 0x12a   :  { %1658 = vmatpush3.bf16.msra.mxu1 %v1730_v8  ;;  %v1788_v8 = vld [vmem:[#allocation2 + $0x150] ss:$8 sps:$4 sm:$0xff]  }
 0x12b   :  { %768 = vmatprep.subr.bf16.mxu1 %v1733_v9  ;;  %v1793_v9 = vld [vmem:[#allocation2 + $0x164] ss:$8 sps:$4 sm:$0xff]  }
 0x1e0   :  { %v1568_v58 = vpop.f32.mrb[0].mxu1 }
 0x1e1   :  { %v1569_v60 = vpop.f32.mrb[1].mxu1 }
 0x1e2   :  { %v1570_v61 = vadd.f32 %v1569_v60, %v1568_v58  ;;  %v1571_v62 = vpop.f32.mrb[2].mxu1 }
 0x1e3   :  { %v1572_v63 = vpop.f32.mrb[3].mxu1 }
 0x1e4   :  { %v309_v1 = vadd.f32 %v1570_v61, %v177_v59  ;;  %v1573_v2 = vadd.f32 %v1572_v63, %v1571_v62  ;;  %v1779_v63 = vld [vmem:[#allocation2 + $0x120] ss:$8 sps:$4 sm:$0xff]  }
 0x1e6   :  { %v312_v3 = vadd.f32 %v1573_v2, %v177_v59  ;;  %v315_v4 = vmax.f32 %v309_v1, 0.0  ;;  %v1784_v2 = vld [vmem:[#allocation2 + $0x134] ss:$8 sps:$4 sm:$0xff]  }
 0x1e8   :  { %v316_v5 = vmax.f32 %v312_v3, 0.0  ;;  %v809_v3 = vld [vmem:[%s2043_s1] sm:$0xf] }
 0x1ea   :  { %v317_v6 = vpack.c.bf16 %v316_v5, %v315_v4  ;;  %v1782_v4 = vld [vmem:[#allocation2 + $0x130] ss:$8 sps:$4 sm:$0xff]   ;;  %v1787_v5 = vld [vmem:[#allocation2 + $0x144] ss:$8 sps:$4 sm:$0xff]  }
 0x1ec   :  { %1640 = vmatmul.mubr.bf16.vlgmr.msra.gmra.mrb[4].mxu0 %v317_v6  ;;  %v1785_v6 = vld [vmem:[#allocation2 + $0x140] ss:$8 sps:$4 sm:$0xff]  }
 0x1ed   :  { %679 = vmatprep.mubr.bf16.mxu0 %v1908_v0  ;;  %648 = vmatpush1.bf16.msra.mxu0 %v1734_v10  ;;  %v1791_v10 = vld [vmem:[#allocation2 + $0x160] ss:$8 sps:$4 sm:$0xff]  }
 0x1ee   :  { %649 = vmatprep.subr.bf16.mxu0 %v1742_v12  ;;  %v1799_v12 = vld [vmem:[#allocation2 + $0x184] ss:$8 sps:$4 sm:$0xff]  }
 0x1f1   :  { %650 = vmatpush1.bf16.msra.mxu0 %v1740_v13  ;;  %v1797_v13 = vld [vmem:[#allocation2 + $0x180] ss:$8 sps:$4 sm:$0xff]  }
 0x1f2   :  { %651 = vmatprep.subr.bf16.mxu0 %v1748_v14  ;;  %v1802_v14 = vld [vmem:[#allocation2 + $0x194] ss:$8 sps:$4 sm:$0xff]  }
 0x1f5   :  { %652 = vmatpush1.bf16.msra.mxu0 %v1746_v15  ;;  %v1800_v15 = vld [vmem:[#allocation2 + $0x190] ss:$8 sps:$4 sm:$0xff]  }
 0x1f6   :  { %653 = vmatprep.subr.bf16.mxu0 %v1754_v16  ;;  %v1805_v16 = vld [vmem:[#allocation2 + $0x1a4] ss:$8 sps:$4 sm:$0xff]  }
 0x1f9   :  { %654 = vmatpush1.bf16.msra.mxu0 %v1752_v17  ;;  %v1803_v17 = vld [vmem:[#allocation2 + $0x1a0] ss:$8 sps:$4 sm:$0xff]  }
 0x1fa   :  { %655 = vmatprep.subr.bf16.mxu0 %v1760_v18  ;;  %v1808_v18 = vld [vmem:[#allocation2 + $0x1b4] ss:$8 sps:$4 sm:$0xff]  }
 0x1fd   :  { %656 = vmatpush1.bf16.msra.mxu0 %v1758_v19  ;;  %v1806_v19 = vld [vmem:[#allocation2 + $0x1b0] ss:$8 sps:$4 sm:$0xff]  }
 0x1fe   :  { %657 = vmatprep.subr.bf16.mxu0 %v1766_v20  ;;  %v1811_v20 = vld [vmem:[#allocation2 + $0x1c4] ss:$8 sps:$4 sm:$0xff]  }
 0x201   :  { %658 = vmatpush1.bf16.msra.mxu0 %v1764_v21  ;;  %v1809_v21 = vld [vmem:[#allocation2 + $0x1c0] ss:$8 sps:$4 sm:$0xff]  }
 0x202   :  { %659 = vmatprep.subr.bf16.mxu0 %v1772_v22  ;;  %v1814_v22 = vld [vmem:[#allocation2 + $0x1d4] ss:$8 sps:$4 sm:$0xff]  }
 0x205   :  { %660 = vmatpush1.bf16.msra.mxu0 %v1770_v24  ;;  %v1812_v24 = vld [vmem:[#allocation2 + $0x1d0] ss:$8 sps:$4 sm:$0xff]  }
 0x206   :  { %661 = vmatprep.subr.bf16.mxu0 %v1778_v52 }
 0x209   :  { %662 = vmatpush1.bf16.msra.mxu0 %v1776_v53 }
 0x20a   :  { %826 = vmatprep.subr.bf16.mxu0 %v1781_v54 }
 0x2bf   :  { %v417_v26 = vpop.f32.mrb[4].mxu0 }
 0x2c0   :  { %v418_v27 = vadd.f32 %v417_v26, %v334_v25  ;;  %v1641_v28 = vpop.f32.mrb[5].mxu0  ;;  %v1815_v26 = vld [vmem:[#allocation2 + $0x1e0] ss:$8 sps:$4 sm:$0xff]  }
 0x2c1   :  { %v420_v29 = vpop.f32.mrb[6].mxu0  ;;  %v1818_v28 = vld [vmem:[#allocation2 + $0x1f0] ss:$8 sps:$4 sm:$0xff]  }
 0x2c2   :  { %v421_v31 = vadd.f32 %v420_v29, %v334_v25  ;;  %v1642_v33 = vpop.f32.mrb[7].mxu0  ;;  %v424_v34 = vmax.f32 %v418_v27, 0.0  ;;  %v1817_v25 = vld [vmem:[#allocation2 + $0x1e4] ss:$8 sps:$4 sm:$0xff]   ;;  %v1820_v27 = vld [vmem:[#allocation2 + $0x1f4] ss:$8 sps:$4 sm:$0xff]  }
 0x2c3   :  { %v1823_v29 = vld [vmem:[#allocation2 + $0x204] ss:$8 sps:$4 sm:$0xff]   ;;  %v1826_v33 = vld [vmem:[#allocation2 + $0x214] ss:$8 sps:$4 sm:$0xff]  }
 0x2c4   :  { %v425_v35 = vmax.f32 %v421_v31, 0.0  ;;  %v1821_v31 = vld [vmem:[#allocation2 + $0x200] ss:$8 sps:$4 sm:$0xff]  }
 0x2c6   :  { %v426_v37 = vpack.c.bf16 %v425_v35, %v424_v34  ;;  %v1824_v34 = vld [vmem:[#allocation2 + $0x210] ss:$8 sps:$4 sm:$0xff]   ;;  %v1829_v35 = vld [vmem:[#allocation2 + $0x224] ss:$8 sps:$4 sm:$0xff]  }
 0x2c8   :  { %1660 = vmatmul.mubr.bf16.vlgmr.msra.gmra.mrb[4].mxu1 %v426_v37  ;;  %v1830_v37 = vld [vmem:[#allocation4 + $0x140] sm:$0xff]  }
 0x2c9   :  { %769 = vmatpush1.bf16.msra.mxu1 %v1731_v36  ;;  %800 = vmatprep.mubr.bf16.mxu1 %v1908_v0  ;;  %v1827_v36 = vld [vmem:[#allocation2 + $0x220] ss:$8 sps:$4 sm:$0xff]  }
 0x2ca   :  { %770 = vmatprep.subr.bf16.mxu1 %v1739_v38  ;;  %v1831_v38 = vld [vmem:[#allocation4 + $0x100] sm:$0xff]  }
 0x2cd   :  { %771 = vmatpush1.bf16.msra.mxu1 %v1737_v39  ;;  %v1832_v39 = vld [vmem:[#allocation4 + $0x148] sm:$0xff]  }
 0x2ce   :  { %772 = vmatprep.subr.bf16.mxu1 %v1745_v40  ;;  %v1833_v40 = vld [vmem:[#allocation4 + $0x108] sm:$0xff]  }
 0x2d1   :  { %773 = vmatpush1.bf16.msra.mxu1 %v1743_v41  ;;  %v1834_v41 = vld [vmem:[#allocation4 + $0x150] sm:$0xff]  }
 0x2d2   :  { %774 = vmatprep.subr.bf16.mxu1 %v1751_v42  ;;  %v1835_v42 = vld [vmem:[#allocation4 + $0x110] sm:$0xff]  }
 0x2d5   :  { %775 = vmatpush1.bf16.msra.mxu1 %v1749_v43  ;;  %v1836_v43 = vld [vmem:[#allocation4 + $0x158] sm:$0xff]  }
 0x2d6   :  { %776 = vmatprep.subr.bf16.mxu1 %v1757_v44  ;;  %v1837_v44 = vld [vmem:[#allocation4 + $0x118] sm:$0xff]  }
 0x2d9   :  { %777 = vmatpush1.bf16.msra.mxu1 %v1755_v45  ;;  %v1838_v45 = vld [vmem:[#allocation4 + $0x160] sm:$0xff]  }
 0x2da   :  { %778 = vmatprep.subr.bf16.mxu1 %v1763_v46  ;;  %v1839_v46 = vld [vmem:[#allocation4 + $0x120] sm:$0xff]  }
 0x2dd   :  { %779 = vmatpush1.bf16.msra.mxu1 %v1761_v47  ;;  %v1840_v47 = vld [vmem:[#allocation4 + $0x168] sm:$0xff]  }
 0x2de   :  { %780 = vmatprep.subr.bf16.mxu1 %v1769_v48  ;;  %v1841_v48 = vld [vmem:[#allocation4 + $0x128] sm:$0xff]  }
 0x2e1   :  { %781 = vmatpush1.bf16.msra.mxu1 %v1767_v49 }
 0x2e2   :  { %782 = vmatprep.subr.bf16.mxu1 %v1775_v50 }
 0x2e5   :  { %783 = vmatpush1.bf16.msra.mxu1 %v1773_v51 }
 0x2e6   :  { %1592 = vmatprep.subr.bf16.mxu1 %v1830_v37  ;;  %v1170_v37 = vld [vmem:[%s2046_s4 + $0x6] ss:$0 sm:$0xff] }
 0x39b   :  { %v526_v56 = vpop.f32.mrb[4].mxu1 }
 0x39c   :  { %v527_v57 = vadd.f32 %v526_v56, %v443_v55  ;;  %v1661_v58 = vpop.f32.mrb[5].mxu1 }
 0x39d   :  { %v529_v59 = vpop.f32.mrb[6].mxu1 }
 0x39e   :  { %v533_v60 = vpack.c.bf16 %v527_v57, %v527_v57  ;;  %v530_v61 = vadd.f32 %v529_v59, %v443_v55  ;;  %v1662_v62 = vpop.f32.mrb[7].mxu1  ;;  %v1494_v59 = vld [vmem:[%s2046_s4 + $0x4] ss:$8 sm:$0x3] }
 0x39f   :  { %v879_v62 = vrot.slane %v1494_v59, %v1981_v32 }
 0x3a0   :  { %v534_v1 = vpack.c.bf16 %v530_v61, %v530_v61  ;;  %801 = vmatmul.mubr.bf16.vlgmr.msra.gmra.mrb[8].mxu1 %v533_v60  ;;  %v875_v60 = vrot.slane %v1494_v59, %v1976_v30 }
 0x3a1   :  { %1593 = vmatpush3.bf16.msra.mxu1 %v1831_v38 }
 0x3a2   :  { %680 = vmatmul.mubr.bf16.vlgmr.msra.gmra.mrb[8].mxu0 %v534_v1  ;;  %1594 = vmatprep.subr.bf16.mxu1 %v1832_v39 }
 0x3a3   :  { %827 = vmatpush1.bf16.msra.mxu0 %v1779_v63  ;;  %858 = vmatprep.mubr.bf16.mxu0 %v1908_v0  ;;  %v1796_v0 = vld [vmem:[#allocation2 + $0x174] ss:$8 sps:$4 sm:$0xff]  }
 0x3a4   :  { %1093 = vmatprep.subr.bf16.mxu0 %v1784_v2 }
 0x3a5   :  { %1595 = vmatpush3.bf16.msra.mxu1 %v1833_v40 }
 0x3a6   :  { %1596 = vmatprep.subr.bf16.mxu1 %v1834_v41 }
 0x3a9   :  { %1597 = vmatpush3.bf16.msra.mxu1 %v1835_v42 }
 0x3aa   :  { %1493 = vmatmul.mubr.msk.bf16.vlgmr.msra.gmra.mrb[12].mxu0 %vm822_vm2, %v809_v3  ;;  %1598 = vmatprep.subr.bf16.mxu1 %v1836_v43 }
 0x3ab   :  { %1094 = vmatpush1.bf16.msra.mxu0 %v1782_v4 }
 0x3ac   :  { %1095 = vmatprep.subr.bf16.mxu0 %v1787_v5 }
 0x3ad   :  { %1599 = vmatpush3.bf16.msra.mxu1 %v1837_v44 }
 0x3ae   :  { %1600 = vmatprep.subr.bf16.mxu1 %v1838_v45  ;;  %v1325_v45 = vld [vmem:[%s2046_s4 + $0x7] ss:$0 sm:$0xff] }
 0x3af   :  { %1096 = vmatpush1.bf16.msra.mxu0 %v1785_v6 }
 0x3b0   :  { %1097 = vmatprep.subr.bf16.mxu0 %v1790_v7 }
 0x3b1   :  { %1601 = vmatpush3.bf16.msra.mxu1 %v1839_v46 }
 0x3b2   :  { %1602 = vmatprep.subr.bf16.mxu1 %v1840_v47 }
 0x3b3   :  { %1098 = vmatpush1.bf16.msra.mxu0 %v1788_v8 }
 0x3b4   :  { %1099 = vmatprep.subr.bf16.mxu0 %v1793_v9 }
 0x3b5   :  { %1603 = vmatpush3.bf16.msra.mxu1 %v1841_v48 }
 0x3b7   :  { %1100 = vmatpush1.bf16.msra.mxu0 %v1791_v10 }
 0x3b8   :  { %1101 = vmatprep.subr.bf16.mxu0 %v1796_v0  ;;  %v1842_v0 = vld [vmem:[#allocation4 + $0x170] sm:$0xff]  }
 0x3b9   :  { %1604 = vmatprep.subr.bf16.mxu1 %v1842_v0 }
 0x3bb   :  { %1102 = vmatpush1.bf16.msra.mxu0 %v1794_v11  ;;  %v1843_v11 = vld [vmem:[#allocation4 + $0x130] sm:$0xff]  }
 0x3bc   :  { %1103 = vmatprep.subr.bf16.mxu0 %v1799_v12  ;;  %1605 = vmatpush3.bf16.msra.mxu1 %v1843_v11  ;;  %v1844_v12 = vld [vmem:[#allocation4 + $0x178] sm:$0xff]  }
 0x3bd   :  { %1606 = vmatprep.subr.bf16.mxu1 %v1844_v12 }
 0x3bf   :  { %1104 = vmatpush1.bf16.msra.mxu0 %v1797_v13  ;;  %v1845_v13 = vld [vmem:[#allocation4 + $0x138] sm:$0xff]  }
 0x3c0   :  { %1105 = vmatprep.subr.bf16.mxu0 %v1802_v14  ;;  %1607 = vmatpush3.bf16.msra.mxu1 %v1845_v13  ;;  %v1495_v14 = vld [vmem:[%s2046_s4 + $0x5] ss:$8 sm:$0x3] }
 0x3c1   :  { %1663 = vmatprep.subr.bf16.mxu1 %v1909_v23 }
 0x3c3   :  { %1106 = vmatpush1.bf16.msra.mxu0 %v1800_v15  ;;  %v926_v15 = vrot.slane %v1495_v14, %v1976_v30  ;;  %v1848_v30 = vld [vmem:[#allocation4 + $0x190] sm:$0xff]  }
 0x3c4   :  { %1107 = vmatprep.subr.bf16.mxu0 %v1805_v16  ;;  %v930_v16 = vrot.slane %v1495_v14, %v1981_v32  ;;  %v1849_v32 = vld [vmem:[#allocation4 + $0x198] sm:$0xff]  }
 0x3c7   :  { %1108 = vmatpush1.bf16.msra.mxu0 %v1803_v17 }
 0x3c8   :  { %1109 = vmatprep.subr.bf16.mxu0 %v1808_v18 }
 0x3cb   :  { %1110 = vmatpush1.bf16.msra.mxu0 %v1806_v19 }
 0x3cc   :  { %1111 = vmatprep.subr.bf16.mxu0 %v1811_v20 }
 0x3cf   :  { %1112 = vmatpush1.bf16.msra.mxu0 %v1809_v21 }
 0x3d0   :  { %1113 = vmatprep.subr.bf16.mxu0 %v1814_v22 }
 0x3d3   :  { %1114 = vmatpush1.bf16.msra.mxu0 %v1812_v24 }
 0x3d4   :  { %1115 = vmatprep.subr.bf16.mxu0 %v1817_v25 }
 0x3d7   :  { %1116 = vmatpush1.bf16.msra.mxu0 %v1815_v26 }
 0x3d8   :  { %1117 = vmatprep.subr.bf16.mxu0 %v1820_v27  ;;  %v1846_v27 = vld [vmem:[#allocation4 + $0x180] sm:$0xff]  }
 0x3db   :  { %1118 = vmatpush1.bf16.msra.mxu0 %v1818_v28 }
 0x3dc   :  { %1119 = vmatprep.subr.bf16.mxu0 %v1823_v29  ;;  %v1847_v29 = vld [vmem:[#allocation4 + $0x188] sm:$0xff]  }
 0x3df   :  { %1120 = vmatpush1.bf16.msra.mxu0 %v1821_v31  ;;  %v1850_v31 = vld [vmem:[#allocation4 + $0x1a0] sm:$0xff]  }
 0x3e0   :  { %1121 = vmatprep.subr.bf16.mxu0 %v1826_v33  ;;  %v1851_v33 = vld [vmem:[#allocation4 + $0x1a8] sm:$0xff]  }
 0x3e3   :  { %1122 = vmatpush1.bf16.msra.mxu0 %v1824_v34  ;;  %v1852_v34 = vld [vmem:[#allocation4 + $0x1b0] sm:$0xff]  }
 0x3e4   :  { %1123 = vmatprep.subr.bf16.mxu0 %v1829_v35  ;;  %v1853_v35 = vld [vmem:[#allocation4 + $0x1b8] sm:$0xff]  }
 0x3e7   :  { %1124 = vmatpush1.bf16.msra.mxu0 %v1827_v36 }
 0x473   :  { %v802_v49 = vpop.f32.mrb[8].mxu1 }
 0x474   :  { %v804_v50 = vpop.f32.mrb[9].mxu1 }
 0x475   :  { %v681_v51 = vpop.f32.mrb[8].mxu0  ;;  %v806_v52 = vpop.f32.mrb[10].mxu1 }
 0x476   :  { %v803_v53 = vadd.f32 %v802_v49, %v681_v51  ;;  %v683_v54 = vpop.f32.mrb[9].mxu0  ;;  %v807_v55 = vpop.f32.mrb[11].mxu1 }
 0x477   :  { %v805_v56 = vadd.f32 %v804_v50, %v683_v54  ;;  %v685_v57 = vpop.f32.mrb[10].mxu0 }
 0x478   :  { %v686_v58 = vpop.f32.mrb[11].mxu0 }
 0x47d   :  { %v860_v61 = vpop.f32.mrb[12].mxu0 }
 0x47e   :  { %v867_v63 = vadd.f32 %v860_v61, %v803_v53  ;;  %v862_v1 = vpop.f32.mrb[13].mxu0 }
 0x47f   :  { %v868_v2 = vadd.f32 %v862_v1, %v805_v56  ;;  %v864_v3 = vpop.f32.mrb[14].mxu0 }
 0x480   :  { %v882_v4 = vadd.f32 %v875_v60, %v867_v63  ;;  %v865_v5 = vpop.f32.mrb[15].mxu0 }
 0x481   :  { %v883_v6 = vadd.f32 %v879_v62, %v868_v2 }
 0x482   :  { %v884_v7 = vmax.f32 %v882_v4, 0.0 }
 0x483   :  { %v885_v8 = vmax.f32 %v883_v6, 0.0 }
 0x484   :  { %v886_v10 = vpack.c.bf16 %v884_v7, %v884_v7 }
 0x485   :  { %v887_v9 = vpack.c.bf16 %v885_v8, %v885_v8 }
 0x487   :  { %1125 = vmatprep.mubr.bf16.mxu0 %v887_v9 }
 0x488   :  { %1126 = vmatmul.mubr.bf16.vlgmr.msra.gmra.mrb[16].mxu0 %v886_v10 }
 0x55b   :  { %v1127_v17 = vpop.f32.mrb[16].mxu0 }
 0x55c   :  { %v1128_v18 = vadd.f32 %v1127_v17, %v926_v15  ;;  %v1129_v19 = vpop.f32.mrb[17].mxu0 }
 0x55d   :  { %v1130_v20 = vadd.f32 %v1129_v19, %v930_v16  ;;  %v1131_v21 = vpop.f32.mrb[18].mxu0 }
 0x55e   :  { %v1134_v22 = vmax.f32 %v1128_v18, 0.0  ;;  %v1132_v24 = vpop.f32.mrb[19].mxu0 }
 0x55f   :  { %v1135_v25 = vmax.f32 %v1130_v20, 0.0 }
 0x560   :  { %v1136_v28 = vpack.c.bf16 %v1134_v22, %v1134_v22 }
 0x561   :  { %v1137_v26 = vpack.c.bf16 %v1135_v25, %v1135_v25 }
 0x563   :  { %1299 = vmatprep.mubr.bf16.mxu1 %v1137_v26 }
 0x564   :  { %1300 = vmatmul.mubr.bf16.vlgmr.msra.gmra.mrb[12].mxu1 %v1136_v28 }
 0x565   :  { %1664 = vmatpush3.bf16.msra.mxu1 %v1846_v27  ;;  %1679 = vmatprep.mubr.msk.bf16.mxu1 %vm1910_vm1, %v1909_v23 }
 0x566   :  { %1665 = vmatprep.subr.bf16.mxu1 %v1909_v23 }
 0x569   :  { %1666 = vmatpush3.bf16.msra.mxu1 %v1847_v29 }
 0x56a   :  { %1667 = vmatprep.subr.bf16.mxu1 %v1909_v23 }
 0x56d   :  { %1668 = vmatpush3.bf16.msra.mxu1 %v1848_v30 }
 0x56e   :  { %1669 = vmatprep.subr.bf16.mxu1 %v1909_v23 }
 0x571   :  { %1670 = vmatpush3.bf16.msra.mxu1 %v1849_v32 }
 0x572   :  { %1671 = vmatprep.subr.bf16.mxu1 %v1909_v23 }
 0x575   :  { %1672 = vmatpush3.bf16.msra.mxu1 %v1850_v31 }
 0x576   :  { %1673 = vmatprep.subr.bf16.mxu1 %v1909_v23 }
 0x579   :  { %1674 = vmatpush3.bf16.msra.mxu1 %v1851_v33 }
 0x57a   :  { %1675 = vmatprep.subr.bf16.mxu1 %v1909_v23 }
 0x57d   :  { %1676 = vmatpush3.bf16.msra.mxu1 %v1852_v34 }
 0x57e   :  { %1677 = vmatprep.subr.bf16.mxu1 %v1909_v23 }
 0x581   :  { %1678 = vmatpush3.bf16.msra.mxu1 %v1853_v35 }
 0x637   :  { %v1608_v36 = vpop.f32.mrb[12].mxu1 }
 0x638   :  { %v1609_v38 = vpop.f32.mrb[13].mxu1 }
 0x639   :  { %v1610_v39 = vadd.f32 %v1609_v38, %v1608_v36  ;;  %v1611_v40 = vpop.f32.mrb[14].mxu1 }
 0x63a   :  { %v1612_v41 = vpop.f32.mrb[15].mxu1 }
 0x63b   :  { %v1302_v42 = vadd.f32 %v1610_v39, %v1170_v37 }
 0x63d   :  { %v1307_v43 = vmax.f32 %v1302_v42, 0.0 }
 0x63f   :  { %v1308_v44 = vpack.c.bf16 %v1307_v43, %v1307_v43 }
 0x641   :  { %1680 = vmatmul.mubr.bf16.vlgmr.msra.gmra.mrb[16].mxu1 %v1308_v44 }
 0x714   :  { %v1408_v23 = vpop.f32.mrb[16].mxu1 }
 0x715   :  { %v1409_v46 = vadd.f32 %v1408_v23, %v1325_v45  ;;  %v1681_v47 = vpop.f32.mrb[17].mxu1 }
 0x716   :  { %v1411_v48 = vpop.f32.mrb[18].mxu1 }
 0x717   :  { %1414 = vst [vmem:[%s2047_s5] sm:$0xff] %v1409_v46  ;;  %v1682_v49 = vpop.f32.mrb[19].mxu1 }
 0x718   :  { %1419 = vsyncpa [#allocation3], 1 }
 0x719   :  { %1420 = vsyncpa [#allocation5], 1 }

</bundles_post_ra>
